<compile_context>
chip_gen: v6e
topology: v6e:2x2x1
jax: 0.10.0
libtpu: 0.0.40
codegen_flags: <defaults>
</compile_context>

<pallas_src>
import math

import jax
import jax.numpy as jnp
from jax.experimental import pallas as pl
from jax.experimental.pallas import tpu as pltpu


# --------------------------------------------------------------------------
# Config (matches the PyTorch defaults: 2 -> 64 -> 128 -> 1).
# --------------------------------------------------------------------------
IN_DIM = 2
H1 = 64
H2 = 128
OUT_DIM = 1

PAD = 128          # padded hidden width (lane / MXU friendly)
IN_ROWS = 8        # sublane-aligned input rows: [x0, x1, 1, 0, 0, 0, 0, 0]
BIAS_COL = IN_DIM  # w1 column that multiplies the constant-1 input row (= fc1 bias)
CONST_ROW = H1     # h1 row that re-emits the constant 1 (carries fc2's bias)
OUT_PAD = 8        # sublane-aligned output rows (row 0 is the real output)
BATCH = 512


def pick_tile_b(batch):
    """One grid step on single-TC chips (v5e/v6e); two parallel tiles on v7x."""
    try:
        kind = jax.devices()[0].device_kind.lower()
    except Exception:
        kind = ""
    two_core = ("v7" in kind) or ("7x" in kind)
    if two_core and batch >= 256 and (batch // 2) % 128 == 0:
        return batch // 2
    return batch


# --------------------------------------------------------------------------
# Pallas kernel: full 3-layer MLP forward for one batch tile (feature-major).
# --------------------------------------------------------------------------
def mlp_kernel(x_ref, w1_ref, w2_ref, w3_ref, b3_ref, o_ref):
    # x_ref : (IN_ROWS, TB) f32   rows 0..1 = x.T, row 2 = 1.0, rest 0
    # w1_ref: (PAD, IN_ROWS) f32  fc1 weight (cols 0..1) + fc1 bias (col 2);
    #                             row CONST_ROW re-emits the constant 1
    # w2_ref: (PAD, PAD) bf16     fc2 weight (cols 0..H1-1) + fc2 bias (col CONST_ROW)
    # w3_ref: (OUT_PAD, PAD) bf16 fc3 weight in row 0, rows 1..7 zero
    # b3_ref: (1,) f32 in SMEM    fc3 bias (scalar)
    # o_ref : (OUT_PAD, TB) f32   lane-dense output slab (row 0 = fc3 output)
    x = x_ref[...]                                               # (8, TB) f32

    # fc1 (+ bias via the constant-1 channel) on the VPU: 3 broadcast FMAs.
    acc = w1_ref[:, 0:1] * x[0:1, :]                             # (128, TB)
    for k in range(1, IN_DIM + 1):
        acc = acc + w1_ref[:, k:k + 1] * x[k:k + 1, :]
    h1 = jnp.maximum(acc, 0.0)                                   # row CONST_ROW == 1

    # fc2 on the MXU (bf16 operands, f32 accumulate); bias folded via CONST_ROW.
    h2 = jnp.maximum(
        jnp.dot(w2_ref[...], h1.astype(jnp.bfloat16),
                preferred_element_type=jnp.float32),
        0.0)                                                     # (128, TB) f32

    # fc3: (8,128) @ (128,TB) -> direct lane-dense store; scalar bias from SMEM.
    o_ref[...] = (jnp.dot(w3_ref[...], h2.astype(jnp.bfloat16),
                          preferred_element_type=jnp.float32)
                  + b3_ref[0])


def mlp_forward_pallas(x, w1p, w2p, w3p, b3, *, tile_b):
    B = x.shape[0]
    b_pad = tile_b * pl.cdiv(B, tile_b)

    # Thin feature-major input (8 rows): ~16 KiB instead of a 256 KiB 128-row pad.
    x_t = jnp.zeros((IN_ROWS, b_pad), jnp.float32)
    x_t = x_t.at[:IN_DIM, :B].set(x.T)
    x_t = x_t.at[IN_DIM, :].set(1.0)          # constant-1 bias channel

    out8 = pl.pallas_call(
        mlp_kernel,
        out_shape=jax.ShapeDtypeStruct((OUT_PAD, b_pad), jnp.float32),
        grid_spec=pltpu.PrefetchScalarGridSpec(
            num_scalar_prefetch=0,
            grid=(b_pad // tile_b,),
            in_specs=[
                pl.BlockSpec((IN_ROWS, tile_b), lambda i: (0, i)),   # x tile
                pl.BlockSpec((PAD, IN_ROWS), lambda i: (0, 0)),      # fc1 (f32, VPU)
                pl.BlockSpec((PAD, PAD), lambda i: (0, 0)),          # fc2 (bf16)
                pl.BlockSpec((OUT_PAD, PAD), lambda i: (0, 0)),      # fc3 (bf16)
                pl.BlockSpec(memory_space=pltpu.MemorySpace.SMEM),   # fc3 bias scalar
            ],
            out_specs=pl.BlockSpec((OUT_PAD, tile_b), lambda i: (0, i)),
        ),
        compiler_params=pltpu.CompilerParams(
            dimension_semantics=("parallel",)),
    )(x_t, w1p, w2p, w3p, b3)

    # Row 0 of the lane-dense slab is the (B, 1) output.
    return out8[0, :B].reshape(B, OUT_DIM)


# --------------------------------------------------------------------------
# Spectral norm (training-mode forward of torch.nn.utils.spectral_norm with the
# default n_power_iterations=1) — plain-JAX weight preprocessing, done once.
# TODO(synk): PyTorch updates the u/v buffers in place across calls; a single
# forward matches exactly, but that running state is not persisted here.
# --------------------------------------------------------------------------
def spectral_normalize(w, u, n_power_iterations=1, eps=1e-12):
    # w: (out, in) PyTorch layout, u: (out,)
    v = None
    for _ in range(max(n_power_iterations, 1)):
        v = w.T @ u
        v = v / jnp.maximum(jnp.linalg.norm(v), eps)
        u = w @ v
        u = u / jnp.maximum(jnp.linalg.norm(u), eps)
    sigma = u @ (w @ v)
    return w / sigma


def pack_params(params):
    """Spectral-normalize and pack the 3 layers into the kernel's resident buffers."""
    (w1, b1, u1), (w2, b2, u2), (w3, b3, u3) = params
    w1sn = spectral_normalize(w1, u1)            # (64, 2)
    w2sn = spectral_normalize(w2, u2)            # (128, 64)
    w3sn = spectral_normalize(w3, u3)            # (1, 128)

    # fc1 (f32, VPU): weight in cols 0..1, bias in col BIAS_COL; row CONST_ROW
    # re-emits the constant 1 so fc2's bias can ride in the matmul.
    w1p = jnp.zeros((PAD, IN_ROWS), jnp.float32)
    w1p = w1p.at[:H1, :IN_DIM].set(w1sn)
    w1p = w1p.at[:H1, BIAS_COL].set(b1)
    w1p = w1p.at[CONST_ROW, BIAS_COL].set(1.0)

    # fc2 (bf16 MXU): weight in cols 0..H1-1, bias in col CONST_ROW.
    w2p = jnp.zeros((PAD, PAD), jnp.float32)
    w2p = w2p.at[:H2, :H1].set(w2sn)
    w2p = w2p.at[:H2, CONST_ROW].set(b2)

    # fc3 (bf16 MXU): tight (8, 128) block, real weight in row 0.
    w3p = jnp.zeros((OUT_PAD, PAD), jnp.float32)
    w3p = w3p.at[:OUT_DIM, :H2].set(w3sn)

    b3p = jnp.asarray(b3, jnp.float32).reshape(1)
    return w1p, w2p.astype(jnp.bfloat16), w3p.astype(jnp.bfloat16), b3p


# --------------------------------------------------------------------------
# Deterministic parameter init (PyTorch nn.Linear-style uniform fan-in init plus
# a normalized random `u` buffer per layer; synthetic, not a checkpoint).
# --------------------------------------------------------------------------
def _uniform(key, shape, bound):
    return jax.random.uniform(key, shape, jnp.float32, -bound, bound)


def init_params(key):
    sizes = [(IN_DIM, H1), (H1, H2), (H2, OUT_DIM)]
    params = []
    for k, (fin, fout) in zip(jax.random.split(key, len(sizes)), sizes):
        kw, kb, ku = jax.random.split(k, 3)
        bound = 1.0 / math.sqrt(fin)
        w = _uniform(kw, (fout, fin), bound)      # PyTorch (out, in) layout
        b = _uniform(kb, (fout,), bound)
        u = jax.random.normal(ku, (fout,), jnp.float32)
        u = u / jnp.maximum(jnp.linalg.norm(u), 1e-12)
        params.append((w, b, u))
    return params


# --------------------------------------------------------------------------
# Pure-JAX reference (mirrors the PyTorch forward) for a correctness check.
# --------------------------------------------------------------------------
def mlp_forward_ref(x, params):
    hp = jax.lax.Precision.HIGHEST
    h = x
    for l, (w, b, u) in enumerate(params):
        w_sn = spectral_normalize(w, u)
        h = jnp.dot(h, w_sn.T, precision=hp) + b
        if l < 2:
            h = jnp.maximum(h, 0.0)
    return h


if __name__ == "__main__":
    key = jax.random.PRNGKey(0)
    k_params, k_x = jax.random.split(key)

    params = init_params(k_params)
    w1p, w2p, w3p, b3 = pack_params(params)          # hoisted out of per-call path

    x = jax.random.normal(k_x, (BATCH, IN_DIM), jnp.float32)

    tile_b = pick_tile_b(BATCH)
    fwd = jax.jit(mlp_forward_pallas, static_argnames=("tile_b",))
    out = fwd(x, w1p, w2p, w3p, b3, tile_b=tile_b)
    out = jax.block_until_ready(out)

    ref = mlp_forward_ref(x, params)
    assert out.shape == (BATCH, OUT_DIM)
    # bf16 matmul operands (f32 accumulation) -> looser tolerance than pure-f32.
    assert jnp.allclose(out, ref, atol=3e-2, rtol=3e-2), "mismatch vs reference"

    print("KERNEL_OK")
</pallas_src>

<mosaic_0001>
module attributes {stable_mosaic.version = 11 : i64} {
  func.func @mlp_kernel(%arg0: i32, %arg1: memref<8x512xf32, #tpu.memory_space<vmem>>, %arg2: memref<128x8xf32, #tpu.memory_space<vmem>>, %arg3: memref<128x128xbf16, #tpu.memory_space<vmem>>, %arg4: memref<8x128xbf16, #tpu.memory_space<vmem>>, %arg5: memref<1xf32, #tpu.memory_space<smem>>, %arg6: memref<8x512xf32, #tpu.memory_space<vmem>>) attributes {dimension_semantics = [#tpu.dimension_semantics<parallel>], iteration_bounds = array<i64: 1>, scalar_prefetch = 0 : i64, scratch_operands = 0 : i64, tpu.core_type = #tpu.core_type<tc>, window_params = [{transform_indices = @transform_0, window_bounds = array<i64: 8, 512>}, {pipeline_mode = #tpu.pipeline_mode<synchronous>, transform_indices = @transform_1, window_bounds = array<i64: 128, 8>}, {pipeline_mode = #tpu.pipeline_mode<synchronous>, transform_indices = @transform_2, window_bounds = array<i64: 128, 128>}, {pipeline_mode = #tpu.pipeline_mode<synchronous>, transform_indices = @transform_3, window_bounds = array<i64: 8, 128>}, {transform_indices = @transform_4, window_bounds = array<i64: 1>}, {transform_indices = @transform_5, window_bounds = array<i64: 8, 512>}]} {
    %c0 = arith.constant 0 : index
    %c0_0 = arith.constant 0 : index
    %0 = vector.load %arg1[%c0, %c0_0] : memref<8x512xf32, #tpu.memory_space<vmem>>, vector<8x512xf32>
    %c0_1 = arith.constant 0 : index
    %c0_2 = arith.constant 0 : index
    %1 = vector.load %arg2[%c0_1, %c0_2] : memref<128x8xf32, #tpu.memory_space<vmem>>, vector<128x1xf32>
    %2 = vector.extract_strided_slice %0 {offsets = [0, 0], sizes = [1, 512], strides = [1, 1]} : vector<8x512xf32> to vector<1x512xf32>
    %3 = vector.broadcast %1 : vector<128x1xf32> to vector<128x512xf32>
    %4 = vector.broadcast %2 : vector<1x512xf32> to vector<128x512xf32>
    %5 = arith.mulf %3, %4 : vector<128x512xf32>
    %c0_3 = arith.constant 0 : index
    %c1 = arith.constant 1 : index
    %6 = vector.load %arg2[%c0_3, %c1] : memref<128x8xf32, #tpu.memory_space<vmem>>, vector<128x1xf32>
    %7 = vector.extract_strided_slice %0 {offsets = [1, 0], sizes = [1, 512], strides = [1, 1]} : vector<8x512xf32> to vector<1x512xf32>
    %8 = vector.broadcast %6 : vector<128x1xf32> to vector<128x512xf32>
    %9 = vector.broadcast %7 : vector<1x512xf32> to vector<128x512xf32>
    %10 = arith.mulf %8, %9 : vector<128x512xf32>
    %11 = arith.addf %5, %10 : vector<128x512xf32>
    %c0_4 = arith.constant 0 : index
    %c2 = arith.constant 2 : index
    %12 = vector.load %arg2[%c0_4, %c2] : memref<128x8xf32, #tpu.memory_space<vmem>>, vector<128x1xf32>
    %13 = vector.extract_strided_slice %0 {offsets = [2, 0], sizes = [1, 512], strides = [1, 1]} : vector<8x512xf32> to vector<1x512xf32>
    %14 = vector.broadcast %12 : vector<128x1xf32> to vector<128x512xf32>
    %15 = vector.broadcast %13 : vector<1x512xf32> to vector<128x512xf32>
    %16 = arith.mulf %14, %15 : vector<128x512xf32>
    %17 = arith.addf %11, %16 : vector<128x512xf32>
    %cst = arith.constant 0.000000e+00 : f32
    %18 = vector.broadcast %cst : f32 to vector<128x512xf32>
    %19 = arith.maximumf %17, %18 : vector<128x512xf32>
    %c0_5 = arith.constant 0 : index
    %c0_6 = arith.constant 0 : index
    %20 = vector.load %arg3[%c0_5, %c0_6] : memref<128x128xbf16, #tpu.memory_space<vmem>>, vector<128x128xbf16>
    %21 = arith.truncf %19 : vector<128x512xf32> to vector<128x512xbf16>
    %cst_7 = arith.constant dense<0.000000e+00> : vector<128x512xf32>
    %22 = tpu.matmul %20, %21, %cst_7 {dimension_numbers = #tpu.dot_dimension_numbers<[1], [0], [0], [1], [0, 0, 1, 1], [], []>} : vector<128x128xbf16>, vector<128x512xbf16>, vector<128x512xf32> -> vector<128x512xf32>
    %cst_8 = arith.constant 0.000000e+00 : f32
    %23 = vector.broadcast %cst_8 : f32 to vector<128x512xf32>
    %24 = arith.maximumf %22, %23 : vector<128x512xf32>
    %c0_9 = arith.constant 0 : index
    %c0_10 = arith.constant 0 : index
    %25 = vector.load %arg4[%c0_9, %c0_10] : memref<8x128xbf16, #tpu.memory_space<vmem>>, vector<8x128xbf16>
    %26 = arith.truncf %24 : vector<128x512xf32> to vector<128x512xbf16>
    %cst_11 = arith.constant dense<0.000000e+00> : vector<8x512xf32>
    %27 = tpu.matmul %25, %26, %cst_11 {dimension_numbers = #tpu.dot_dimension_numbers<[1], [0], [0], [1], [0, 0, 1, 1], [], []>} : vector<8x128xbf16>, vector<128x512xbf16>, vector<8x512xf32> -> vector<8x512xf32>
    %c0_12 = arith.constant 0 : index
    %28 = memref.load %arg5[%c0_12] : memref<1xf32, #tpu.memory_space<smem>>
    %29 = vector.broadcast %28 : f32 to vector<8x512xf32>
    %30 = arith.addf %27, %29 : vector<8x512xf32>
    %c0_13 = arith.constant 0 : index
    %c0_14 = arith.constant 0 : index
    %31 = vector.load %arg6[%c0_13, %c0_14] : memref<8x512xf32, #tpu.memory_space<vmem>>, vector<8x512xf32>
    tpu.vector_store %arg6[%c0_13, %c0_14], %30 {strides = array<i32>} : memref<8x512xf32, #tpu.memory_space<vmem>>, vector<8x512xf32>,
    return
  }
  func.func @transform_0(%arg0: i32) -> (i32, i32) {
    %c0_i32 = arith.constant 0 : i32
    %c0_i32_0 = arith.constant 0 : i32
    return %c0_i32, %arg0 : i32, i32
  }
  func.func @transform_1(%arg0: i32) -> (i32, i32) {
    %c0_i32 = arith.constant 0 : i32
    %c0_i32_0 = arith.constant 0 : i32
    %c0_i32_1 = arith.constant 0 : i32
    return %c0_i32, %c0_i32_0 : i32, i32
  }
  func.func @transform_2(%arg0: i32) -> (i32, i32) {
    %c0_i32 = arith.constant 0 : i32
    %c0_i32_0 = arith.constant 0 : i32
    %c0_i32_1 = arith.constant 0 : i32
    return %c0_i32, %c0_i32_0 : i32, i32
  }
  func.func @transform_3(%arg0: i32) -> (i32, i32) {
    %c0_i32 = arith.constant 0 : i32
    %c0_i32_0 = arith.constant 0 : i32
    %c0_i32_1 = arith.constant 0 : i32
    return %c0_i32, %c0_i32_0 : i32, i32
  }
  func.func @transform_4(%arg0: i32) -> i32 {
    %c0_i32 = arith.constant 0 : i32
    %c0_i32_0 = arith.constant 0 : i32
    return %c0_i32 : i32
  }
  func.func @transform_5(%arg0: i32) -> (i32, i32) {
    %c0_i32 = arith.constant 0 : i32
    %c0_i32_0 = arith.constant 0 : i32
    return %c0_i32, %arg0 : i32, i32
  }
}

</mosaic_0001>

<bundles_post_ra>
// kernel: mlp_forward_pallas.1
= control target key start
LH: loop header
LB: loop body
LE: loop exit
PB: predicated region body
PF: predicated region fallthrough
CT: control target
= control target key end

     0   :  { %v1237_v0 = vmov 1   ;;  %v1880_v1 = vmov 0   ;;  %v1239_v5 = vmov 2   ;;  %v122_v19 = vlaneseq  ;;  %s1874_s1 = inlined_call_operand.vmem [shape: f32[128,8], index: 1, kind: input, shape index: {}]   ;;  %s1875_s0 = inlined_call_operand.vmem [shape: f32[8,512], index: 0, kind: input, shape index: {}]   ;;  %s1876_s2 = inlined_call_operand.vmem [shape: bf16[128,128], index: 2, kind: input, shape index: {}]   ;;  %s1877_s3 = inlined_call_operand.vmem [shape: bf16[8,128], index: 3, kind: input, shape index: {}]   ;;  %s1878_s4 = inlined_call_operand.<no memory space> [shape: f32[1], index: 4, kind: input, shape index: {}]   ;;  %s1879_s5 = inlined_call_operand.vmem [shape: f32[8,512], index: 5, kind: output, shape index: {}]  }
   0x1   :  { %1205 = vset.pattern.permute.xlu1 %v1237_v0  ;;  %1204 = vset.pattern.permute.xlu0 %v1880_v1  ;;  %v40_v2 = vld [vmem:[%s1874_s1 + $0x70] sm:$0xff]  ;;  %v41_v3 = vld [vmem:[%s1874_s1 + $0x78] sm:$0xff]  ;;  %v39_v4 = vld [vmem:[%s1874_s1 + $0x68] sm:$0xff] }
   0x2   :  { %259 = vperm.xlu1 %1205, %v40_v2   ;;  %114 = vperm.xlu0 %1204, %v40_v2   ;;  %v37_v6 = vld [vmem:[%s1874_s1 + $0x58] sm:$0xff]  ;;  %v38_v7 = vld [vmem:[%s1874_s1 + $0x60] sm:$0xff]  ;;  %v35_v8 = vld [vmem:[%s1874_s1 + $0x48] sm:$0xff]  ;;  %v123_v22 = vshrl.u32 %v122_v19, 7 }
   0x3   :  { %810 = vmatprep.mubr.bf16.mxu0 %v1880_v1  ;;  %923 = vmatprep.mubr.bf16.mxu1 %v1880_v1  ;;  %v33_v9 = vld [vmem:[%s1874_s1 + $0x38] sm:$0xff]  ;;  %v31_v10 = vld [vmem:[%s1874_s1 + $0x28] sm:$0xff]  ;;  %v36_v13 = vld [vmem:[%s1874_s1 + $0x50] sm:$0xff] }
   0x4   :  { %v29_v11 = vld [vmem:[%s1874_s1 + $0x18] sm:$0xff]  ;;  %v1308_v12 = vld [vmem:[%s1874_s1 + $0x8] sm:$0xff]  ;;  %v34_v14 = vld [vmem:[%s1874_s1 + $0x40] sm:$0xff]  ;;  %v268_v25 = vsub.s32 1, %v123_v22  ;;  %v124_v26 = vsub.s32 0, %v123_v22  ;;  %v476_v29 = vsub.s32 2, %v123_v22 }
   0x5   :  { %v32_v15 = vld [vmem:[%s1874_s1 + $0x30] sm:$0xff]  ;;  %v30_v16 = vld [vmem:[%s1874_s1 + $0x20] sm:$0xff]  ;;  %v23_v28 = vld [vmem:[%s1875_s0 + $0x8] sm:$0xff] }
   0x6   :  { %263 = vperm.xlu1 %1205, %v41_v3   ;;  %119 = vperm.xlu0 %1204, %v41_v3   ;;  %v28_v17 = vld [vmem:[%s1874_s1 + $0x10] sm:$0xff]  ;;  %v26_v18 = vld [vmem:[%s1874_s1] sm:$0xff]  ;;  %v25_v31 = vld [vmem:[%s1875_s0 + $0x18] sm:$0xff]  ;;  %v1358_v33 = vrot.slane %v23_v28, %v268_v25  ;;  %v1360_v34 = vrot.slane %v23_v28, %v124_v26  ;;  %v1371_v39 = vrot.slane %v23_v28, %v476_v29 }
   0x7   :  { %v22_v32 = vld [vmem:[%s1875_s0] sm:$0xff]  ;;  %v24_v36 = vld [vmem:[%s1875_s0 + $0x10] sm:$0xff]  ;;  %v1367_v37 = vrot.slane %v25_v31, %v268_v25  ;;  %v1369_v38 = vrot.slane %v25_v31, %v124_v26  ;;  %v1373_v40 = vrot.slane %v25_v31, %v476_v29 }
   0x8   :  { %v1375_v41 = vrot.slane %v22_v32, %v268_v25  ;;  %v1377_v42 = vrot.slane %v22_v32, %v124_v26  ;;  %v1386_v48 = vrot.slane %v24_v36, %v268_v25  ;;  %v1388_v49 = vrot.slane %v24_v36, %v124_v26 }
   0x9   :  { %v1390_v50 = vrot.slane %v22_v32, %v476_v29  ;;  %v1392_v51 = vrot.slane %v24_v36, %v476_v29 }
   0xa   :  { %1206 = vset.pattern.permute.xlu1 %v1239_v5  ;;  %109 = vperm.xlu0 %1204, %v39_v4  }
   0xb   :  { %471 = vperm.xlu1 %1206, %v41_v3  }
   0xe   :  { %99 = vperm.xlu0 %1204, %v37_v6  }
   0xf   :  { %1207 = vset.pattern.permute.xlu1 %v1880_v1 }
  0x10   :  { %104 = vperm.xlu1 %1207, %v38_v7  }
  0x12   :  { %89 = vperm.xlu0 %1204, %v35_v8  }
  0x14   :  { %1208 = vset.pattern.permute.xlu1 %v1237_v0 }
  0x15   :  { %251 = vperm.xlu1 %1208, %v38_v7  }
  0x16   :  { %79 = vperm.xlu0 %1204, %v33_v9  }
  0x19   :  { %255 = vperm.xlu1 %1208, %v39_v4  }
  0x1a   :  { %69 = vperm.xlu0 %1204, %v31_v10  }
  0x1d   :  { %1209 = vset.pattern.permute.xlu1 %v1239_v5 }
  0x1e   :  { %463 = vperm.xlu1 %1209, %v39_v4   ;;  %59 = vperm.xlu0 %1204, %v29_v11  }
  0x22   :  { %1210 = vset.pattern.permute.xlu1 %v1880_v1  ;;  %49 = vperm.xlu0 %1204, %v1308_v12  }
  0x23   :  { %94 = vperm.xlu1 %1210, %v36_v13  }
  0x26   :  { %1226 = vset.pattern.permute.xlu0 %v1239_v5 }
  0x27   :  { %1211 = vset.pattern.permute.xlu1 %v1237_v0  ;;  %467 = vperm.xlu0 %1226, %v40_v2  }
  0x28   :  { %243 = vperm.xlu1 %1211, %v36_v13  }
  0x2b   :  { %459 = vperm.xlu0 %1226, %v38_v7  }
  0x2c   :  { %247 = vperm.xlu1 %1211, %v37_v6  }
  0x2f   :  { %451 = vperm.xlu0 %1226, %v36_v13  }
  0x30   :  { %1212 = vset.pattern.permute.xlu1 %v1239_v5 }
  0x31   :  { %455 = vperm.xlu1 %1212, %v37_v6  }
  0x33   :  { %443 = vperm.xlu0 %1226, %v34_v14  }
  0x35   :  { %1213 = vset.pattern.permute.xlu1 %v1880_v1 }
  0x36   :  { %84 = vperm.xlu1 %1213, %v34_v14  }
  0x37   :  { %435 = vperm.xlu0 %1226, %v32_v15  }
  0x3a   :  { %1214 = vset.pattern.permute.xlu1 %v1237_v0 }
  0x3b   :  { %235 = vperm.xlu1 %1214, %v34_v14   ;;  %427 = vperm.xlu0 %1226, %v30_v16  }
  0x3f   :  { %239 = vperm.xlu1 %1214, %v35_v8   ;;  %419 = vperm.xlu0 %1226, %v28_v17  }
  0x43   :  { %1215 = vset.pattern.permute.xlu1 %v1239_v5  ;;  %411 = vperm.xlu0 %1226, %v26_v18  }
  0x44   :  { %447 = vperm.xlu1 %1215, %v35_v8  }
  0x48   :  { %1216 = vset.pattern.permute.xlu1 %v1880_v1 }
  0x49   :  { %74 = vperm.xlu1 %1216, %v32_v15  }
  0x4d   :  { %1217 = vset.pattern.permute.xlu1 %v1237_v0 }
  0x4e   :  { %227 = vperm.xlu1 %1217, %v32_v15  }
  0x52   :  { %231 = vperm.xlu1 %1217, %v33_v9  }
  0x56   :  { %1218 = vset.pattern.permute.xlu1 %v1239_v5 }
  0x57   :  { %439 = vperm.xlu1 %1218, %v33_v9  }
  0x5b   :  { %1219 = vset.pattern.permute.xlu1 %v1880_v1 }
  0x5c   :  { %64 = vperm.xlu1 %1219, %v30_v16  }
  0x60   :  { %1220 = vset.pattern.permute.xlu1 %v1237_v0 }
  0x61   :  { %219 = vperm.xlu1 %1220, %v30_v16  }
  0x65   :  { %223 = vperm.xlu1 %1220, %v31_v10  }
  0x69   :  { %1221 = vset.pattern.permute.xlu1 %v1239_v5 }
  0x6a   :  { %431 = vperm.xlu1 %1221, %v31_v10  }
  0x6e   :  { %1222 = vset.pattern.permute.xlu1 %v1880_v1 }
  0x6f   :  { %54 = vperm.xlu1 %1222, %v28_v17  }
  0x73   :  { %1223 = vset.pattern.permute.xlu1 %v1237_v0 }
  0x74   :  { %211 = vperm.xlu1 %1223, %v28_v17  }
  0x78   :  { %215 = vperm.xlu1 %1223, %v29_v11  }
  0x7c   :  { %1224 = vset.pattern.permute.xlu1 %v1239_v5 }
  0x7d   :  { %v260_v20 = vpop.permute.xlu1 %259  ;;  %v115_v21 = vpop.permute.xlu0 %114  ;;  %423 = vperm.xlu1 %1224, %v29_v11  }
  0x7e   :  { %v338_v59 = vmul.f32 %v1375_v41, %v260_v20  ;;  %v339_v60 = vmul.f32 %v1358_v33, %v260_v20  ;;  %v195_v2 = vmul.f32 %v1360_v34, %v115_v21  ;;  %v197_v7 = vmul.f32 %v1369_v38, %v115_v21 }
  0x7f   :  { %v340_v10 = vmul.f32 %v1386_v48, %v260_v20  ;;  %v196_v11 = vmul.f32 %v1388_v49, %v115_v21 }
  0x80   :  { %v1422_v16 = vadd.f32 %v339_v60, %v195_v2 }
  0x81   :  { %v264_v23 = vpop.permute.xlu1 %263  ;;  %v120_v24 = vpop.permute.xlu0 %119  ;;  %1225 = vset.pattern.permute.xlu1 %v1880_v1  ;;  %v404_v26 = vadd.f32 %v340_v10, %v196_v11 }
  0x82   :  { %44 = vperm.xlu1 %1225, %v26_v18   ;;  %v343_v44 = vmul.f32 %v1358_v33, %v264_v23  ;;  %v345_v45 = vmul.f32 %v1367_v37, %v264_v23  ;;  %v199_v46 = vmul.f32 %v1360_v34, %v120_v24  ;;  %v201_v47 = vmul.f32 %v1369_v38, %v120_v24 }
  0x83   :  { %v342_v55 = vmul.f32 %v1375_v41, %v264_v23  ;;  %v344_v56 = vmul.f32 %v1386_v48, %v264_v23  ;;  %v198_v57 = vmul.f32 %v1377_v42, %v120_v24  ;;  %v200_v58 = vmul.f32 %v1388_v49, %v120_v24 }
  0x84   :  { %v407_v62 = vadd.f32 %v343_v44, %v199_v46  ;;  %v409_v63 = vadd.f32 %v345_v45, %v201_v47 }
  0x85   :  { %v1346_v27 = vpop.permute.xlu0 %109  ;;  %v408_v13 = vadd.f32 %v344_v56, %v200_v58 }
  0x86   :  { %v472_v30 = vpop.permute.xlu1 %471  ;;  %1227 = vset.pattern.permute.xlu1 %v1237_v0  ;;  %v341_v0 = vmul.f32 %v1367_v37, %v260_v20  ;;  %v191_v24 = vmul.f32 %v1360_v34, %v1346_v27  ;;  %v192_v25 = vmul.f32 %v1388_v49, %v1346_v27  ;;  %v193_v28 = vmul.f32 %v1369_v38, %v1346_v27 }
  0x87   :  { %203 = vperm.xlu1 %1227, %v26_v18   ;;  %v551_v53 = vmul.f32 %v1371_v39, %v472_v30  ;;  %v553_v54 = vmul.f32 %v1373_v40, %v472_v30  ;;  %v550_v3 = vmul.f32 %v1390_v50, %v472_v30  ;;  %v552_v4 = vmul.f32 %v1392_v51, %v472_v30 }
  0x88   :  { %v1429_v22 = vadd.f32 %v341_v0, %v197_v7 }
  0x89   :  { %v1362_v35 = vpop.permute.xlu0 %99  ;;  %v1414_v8 = vadd.f32 %v551_v53, %v407_v62  ;;  %v1416_v9 = vadd.f32 %v553_v54, %v409_v63  ;;  %v1426_v18 = vadd.f32 %v552_v4, %v408_v13 }
  0x8a   :  { %v1444_v29 = vmul.f32 %v1377_v42, %v1362_v35  ;;  %v1448_v30 = vmul.f32 %v1360_v34, %v1362_v35  ;;  %v1453_v32 = vmul.f32 %v1388_v49, %v1362_v35  ;;  %v1457_v36 = vmul.f32 %v1369_v38, %v1362_v35 }
  0x8b   :  { %v1379_v43 = vpop.permute.xlu1 %104  ;;  %207 = vperm.xlu1 %1227, %v1308_v12  }
  0x8c   :  { %v186_v47 = vmul.f32 %v1377_v42, %v1379_v43  ;;  %v187_v53 = vmul.f32 %v1360_v34, %v1379_v43  ;;  %v188_v54 = vmul.f32 %v1388_v49, %v1379_v43  ;;  %v189_v0 = vmul.f32 %v1369_v38, %v1379_v43 }
  0x8d   :  { %v1394_v52 = vpop.permute.xlu0 %89 }
  0x8e   :  { %v1486_v7 = vmul.f32 %v1377_v42, %v1394_v52  ;;  %v1490_v10 = vmul.f32 %v1360_v34, %v1394_v52 }
  0x8f   :  { %1228 = vset.pattern.permute.xlu1 %v1239_v5  ;;  %v194_v5 = vmul.f32 %v1377_v42, %v115_v21  ;;  %v190_v21 = vmul.f32 %v1377_v42, %v1346_v27 }
  0x90   :  { %v252_v61 = vpop.permute.xlu1 %251  ;;  %415 = vperm.xlu1 %1228, %v1308_v12   ;;  %v406_v12 = vadd.f32 %v342_v55, %v198_v57 }
  0x91   :  { %v1410_v6 = vpop.permute.xlu0 %79  ;;  %v1432_v20 = vadd.f32 %v338_v59, %v194_v5  ;;  %v330_v35 = vmul.f32 %v1375_v41, %v252_v61  ;;  %v331_v59 = vmul.f32 %v1358_v33, %v252_v61  ;;  %v332_v60 = vmul.f32 %v1386_v48, %v252_v61 }
  0x92   :  { %v1424_v17 = vadd.f32 %v550_v3, %v406_v12  ;;  %v333_v62 = vmul.f32 %v1367_v37, %v252_v61  ;;  %v1494_v61 = vmul.f32 %v1388_v49, %v1394_v52  ;;  %v1500_v12 = vmul.f32 %v1369_v38, %v1394_v52 }
  0x93   :  { %v1506_v1 = vadd.f32 %v332_v60, %v188_v54 }
  0x94   :  { %v256_v14 = vpop.permute.xlu1 %255  ;;  %v397_v46 = vadd.f32 %v333_v62, %v189_v0 }
  0x95   :  { %v1420_v15 = vpop.permute.xlu0 %69  ;;  %v335_v31 = vmul.f32 %v1358_v33, %v256_v14  ;;  %v334_v56 = vmul.f32 %v1375_v41, %v256_v14  ;;  %v336_v57 = vmul.f32 %v1386_v48, %v256_v14  ;;  %v337_v58 = vmul.f32 %v1367_v37, %v256_v14 }
  0x97   :  { %v399_v63 = vadd.f32 %v335_v31, %v191_v24  ;;  %v398_v13 = vadd.f32 %v334_v56, %v190_v21  ;;  %v400_v14 = vadd.f32 %v336_v57, %v192_v25  ;;  %v401_v24 = vadd.f32 %v337_v58, %v193_v28 }
  0x98   :  { %v1502_v31 = vadd.f32 %v330_v35, %v186_v47 }
  0x99   :  { %v464_v44 = vpop.permute.xlu1 %463  ;;  %v1459_v27 = vpop.permute.xlu0 %59 }
  0x9a   :  { %v543_v55 = vmul.f32 %v1371_v39, %v464_v44  ;;  %v542_v2 = vmul.f32 %v1390_v50, %v464_v44  ;;  %v544_v3 = vmul.f32 %v1392_v51, %v464_v44  ;;  %v545_v4 = vmul.f32 %v1373_v40, %v464_v44 }
  0x9b   :  { %v1504_v44 = vadd.f32 %v331_v59, %v187_v53 }
  0x9c   :  { %v1496_v11 = vadd.f32 %v543_v55, %v399_v63  ;;  %v1509_v23 = vadd.f32 %v545_v4, %v401_v24  ;;  %v1511_v55 = vadd.f32 %v542_v2, %v398_v13  ;;  %v1513_v63 = vadd.f32 %v544_v3, %v400_v14 }
  0x9d   :  { %v1482_v5 = vpop.permute.xlu0 %49 }
  0x9e   :  { %1883 = vst [vmem:[#allocation3_spill] sm:$0xff] %v1482_v5  ;;  %v95_v43 = vpop.permute.xlu1 %94 }
  0x9f   :  { %v178_v45 = vmul.f32 %v1377_v42, %v95_v43  ;;  %v179_v52 = vmul.f32 %v1360_v34, %v95_v43  ;;  %v180_v21 = vmul.f32 %v1388_v49, %v95_v43  ;;  %v181_v25 = vmul.f32 %v1369_v38, %v95_v43 }
  0xa2   :  { %v468_v28 = vpop.permute.xlu0 %467 }
  0xa3   :  { %v546_v53 = vmul.f32 %v1390_v50, %v468_v28  ;;  %v548_v54 = vmul.f32 %v1392_v51, %v468_v28  ;;  %v244_v35 = vpop.permute.xlu1 %243  ;;  %v547_v56 = vmul.f32 %v1371_v39, %v468_v28  ;;  %v549_v57 = vmul.f32 %v1373_v40, %v468_v28 }
  0xa4   :  { %v322_v58 = vmul.f32 %v1375_v41, %v244_v35  ;;  %v323_v59 = vmul.f32 %v1358_v33, %v244_v35  ;;  %v324_v60 = vmul.f32 %v1386_v48, %v244_v35  ;;  %v325_v62 = vmul.f32 %v1367_v37, %v244_v35 }
  0xa5   :  { %v611_v0 = vadd.f32 %v547_v56, %v1422_v16  ;;  %v613_v2 = vadd.f32 %v549_v57, %v1429_v22  ;;  %v610_v3 = vadd.f32 %v546_v53, %v1432_v20  ;;  %v612_v4 = vadd.f32 %v548_v54, %v404_v26 }
  0xa6   :  { %v1530_v43 = vadd.f32 %v322_v58, %v178_v45  ;;  %v387_v13 = vadd.f32 %v323_v59, %v179_v52  ;;  %v1532_v14 = vadd.f32 %v324_v60, %v180_v21  ;;  %v460_v24 = vpop.permute.xlu0 %459  ;;  %v673_v28 = vmax.f32 %v1509_v23, 0.0 }
  0xa7   :  { %v389_v47 = vadd.f32 %v325_v62, %v181_v25  ;;  %v538_v19 = vmul.f32 %v1390_v50, %v460_v24  ;;  %v539_v35 = vmul.f32 %v1371_v39, %v460_v24  ;;  %v540_v16 = vmul.f32 %v1392_v51, %v460_v24  ;;  %v248_v56 = vpop.permute.xlu1 %247 }
  0xa8   :  { %v326_v22 = vmul.f32 %v1375_v41, %v248_v56  ;;  %v327_v20 = vmul.f32 %v1358_v33, %v248_v56  ;;  %v328_v26 = vmul.f32 %v1386_v48, %v248_v56  ;;  %v329_v45 = vmul.f32 %v1367_v37, %v248_v56 }
  0xa9   :  { %v675_v52 = vmax.f32 %v611_v0, 0.0  ;;  %v677_v21 = vmax.f32 %v613_v2, 0.0  ;;  %v674_v53 = vmax.f32 %v610_v3, 0.0  ;;  %v676_v23 = vmax.f32 %v612_v4, 0.0 }
  0xaa   :  { %v541_v25 = vmul.f32 %v1373_v40, %v460_v24  ;;  %v390_v54 = vadd.f32 %v326_v22, %v1444_v29  ;;  %v391_v57 = vadd.f32 %v327_v20, %v1448_v30  ;;  %v392_v58 = vadd.f32 %v328_v26, %v1453_v32  ;;  %v452_v59 = vpop.permute.xlu0 %451 }
  0xab   :  { %v393_v60 = vadd.f32 %v329_v45, %v1457_v36  ;;  %v530_v62 = vmul.f32 %v1390_v50, %v452_v59  ;;  %v531_v5 = vmul.f32 %v1371_v39, %v452_v59  ;;  %v533_v0 = vmul.f32 %v1373_v40, %v452_v59 }
  0xac   :  { %v1884_v2 = vmax.f32 %v1414_v8, 0.0  ;;  %v1885_v4 = vmax.f32 %v1416_v9, 0.0  ;;  %v456_v29 = vpop.permute.xlu1 %455  ;;  %v1886_v30 = vmax.f32 %v1424_v17, 0.0  ;;  %v1887_v32 = vmax.f32 %v1426_v18, 0.0 }
  0xad   :  { %v532_v36 = vmul.f32 %v1392_v51, %v452_v59  ;;  %v534_v20 = vmul.f32 %v1390_v50, %v456_v29  ;;  %v535_v26 = vmul.f32 %v1371_v39, %v456_v29  ;;  %v537_v45 = vmul.f32 %v1373_v40, %v456_v29 }
  0xae   :  { %v727_v3 = vpack.c.bf16 %v1884_v2, %v675_v52  ;;  %v729_v24 = vpack.c.bf16 %v1885_v4, %v677_v21  ;;  %v726_v56 = vpack.c.bf16 %v1886_v30, %v674_v53  ;;  %v728_v22 = vpack.c.bf16 %v1887_v32, %v676_v23 }
  0xaf   :  { %v603_v8 = vadd.f32 %v539_v35, %v1504_v44  ;;  %v605_v9 = vadd.f32 %v541_v25, %v397_v46  ;;  %v602_v52 = vadd.f32 %v538_v19, %v1502_v31  ;;  %v670_v17 = vmax.f32 %v1511_v55, 0.0 }
  0xb0   :  { %778 = vmatprep.subr.bf16.mxu0 %v727_v3  ;;  %891 = vmatprep.subr.bf16.mxu1 %v729_v24  ;;  %v604_v18 = vadd.f32 %v540_v16, %v1506_v1  ;;  %v672_v21 = vmax.f32 %v1513_v63, 0.0  ;;  %v595_v53 = vadd.f32 %v531_v5, %v387_v13  ;;  %v599_v23 = vadd.f32 %v535_v26, %v391_v57 }
  0xb1   :  { %779 = vmatpush1.bf16.msra.mxu0 %v726_v56  ;;  %892 = vmatpush1.bf16.msra.mxu1 %v728_v22  ;;  %v667_v59 = vmax.f32 %v603_v8, 0.0  ;;  %v669_v2 = vmax.f32 %v605_v9, 0.0  ;;  %v666_v4 = vmax.f32 %v602_v52, 0.0  ;;  %v597_v3 = vadd.f32 %v533_v0, %v389_v47  ;;  %v85_v46 = vpop.permute.xlu1 %84  ;;  %v444_v47 = vpop.permute.xlu0 %443 }
  0xb2   :  { %v536_v24 = vmul.f32 %v1392_v51, %v456_v29  ;;  %v668_v44 = vmax.f32 %v604_v18, 0.0  ;;  %v663_v35 = vmax.f32 %v599_v23, 0.0  ;;  %v601_v19 = vadd.f32 %v537_v45, %v393_v60 }
  0xb3   :  { %v1888_v31 = vmax.f32 %v1496_v11, 0.0  ;;  %v725_v25 = vpack.c.bf16 %v673_v28, %v669_v2  ;;  %v722_v30 = vpack.c.bf16 %v670_v17, %v666_v4  ;;  %v659_v1 = vmax.f32 %v595_v53, 0.0 }
  0xb4   :  { %v724_v16 = vpack.c.bf16 %v672_v21, %v668_v44  ;;  %v170_v5 = vmul.f32 %v1377_v42, %v85_v46  ;;  %v171_v63 = vmul.f32 %v1360_v34, %v85_v46  ;;  %v172_v13 = vmul.f32 %v1388_v49, %v85_v46 }
  0xb5   :  { %v723_v55 = vpack.c.bf16 %v1888_v31, %v667_v59  ;;  %893 = vmatprep.subr.bf16.mxu1 %v725_v25  ;;  %v719_v57 = vpack.c.bf16 %v663_v35, %v659_v1  ;;  %v661_v0 = vmax.f32 %v597_v3, 0.0  ;;  %v665_v29 = vmax.f32 %v601_v19, 0.0 }
  0xb6   :  { %v594_v60 = vadd.f32 %v530_v62, %v1530_v43  ;;  %894 = vmatpush1.bf16.msra.mxu1 %v724_v16  ;;  %v598_v11 = vadd.f32 %v534_v20, %v390_v54  ;;  %v596_v28 = vadd.f32 %v532_v36, %v1532_v14  ;;  %v600_v56 = vadd.f32 %v536_v24, %v392_v58  ;;  %v236_v26 = vpop.permute.xlu1 %235 }
  0xb7   :  { %780 = vmatprep.subr.bf16.mxu0 %v723_v55  ;;  %v173_v32 = vmul.f32 %v1369_v38, %v85_v46  ;;  %v721_v22 = vpack.c.bf16 %v665_v29, %v661_v0  ;;  %v522_v8 = vmul.f32 %v1390_v50, %v444_v47  ;;  %v314_v9 = vmul.f32 %v1375_v41, %v236_v26 }
  0xb8   :  { %781 = vmatpush1.bf16.msra.mxu0 %v722_v30  ;;  %v658_v45 = vmax.f32 %v594_v60, 0.0  ;;  %v315_v52 = vmul.f32 %v1358_v33, %v236_v26  ;;  %v316_v43 = vmul.f32 %v1386_v48, %v236_v26  ;;  %v317_v62 = vmul.f32 %v1367_v37, %v236_v26 }
  0xb9   :  { %782 = vmatprep.subr.bf16.mxu0 %v719_v57  ;;  %895 = vmatprep.subr.bf16.mxu1 %v721_v22  ;;  %v662_v54 = vmax.f32 %v598_v11, 0.0  ;;  %v660_v14 = vmax.f32 %v596_v28, 0.0  ;;  %v664_v58 = vmax.f32 %v600_v56, 0.0  ;;  %v523_v36 = vmul.f32 %v1371_v39, %v444_v47 }
  0xba   :  { %v378_v20 = vadd.f32 %v314_v9, %v170_v5  ;;  %v379_v17 = vadd.f32 %v315_v52, %v171_v63  ;;  %v380_v18 = vadd.f32 %v316_v43, %v172_v13  ;;  %v524_v21 = vmul.f32 %v1392_v51, %v444_v47  ;;  %v240_v4 = vpop.permute.xlu1 %239 }
  0xbb   :  { %v381_v53 = vadd.f32 %v317_v62, %v173_v32  ;;  %v718_v23 = vpack.c.bf16 %v662_v54, %v658_v45  ;;  %v720_v59 = vpack.c.bf16 %v664_v58, %v660_v14  ;;  %v525_v2 = vmul.f32 %v1373_v40, %v444_v47  ;;  %v436_v62 = vpop.permute.xlu0 %435 }
  0xbc   :  { %v318_v3 = vmul.f32 %v1375_v41, %v240_v4  ;;  %v319_v24 = vmul.f32 %v1358_v33, %v240_v4  ;;  %v320_v44 = vmul.f32 %v1386_v48, %v240_v4  ;;  %v321_v46 = vmul.f32 %v1367_v37, %v240_v4 }
  0xbd   :  { %783 = vmatpush1.bf16.msra.mxu0 %v718_v23  ;;  %896 = vmatpush1.bf16.msra.mxu1 %v720_v59  ;;  %v587_v19 = vadd.f32 %v523_v36, %v379_v17  ;;  %v589_v31 = vadd.f32 %v525_v2, %v381_v53  ;;  %v586_v55 = vadd.f32 %v522_v8, %v378_v20 }
  0xbe   :  { %v382_v35 = vadd.f32 %v318_v3, %v1486_v7  ;;  %v383_v25 = vadd.f32 %v319_v24, %v1490_v10  ;;  %v384_v30 = vadd.f32 %v320_v44, %v1494_v61  ;;  %v385_v1 = vadd.f32 %v321_v46, %v1500_v12 }
  0xbf   :  { %v448_v16 = vpop.permute.xlu1 %447  ;;  %v588_v5 = vadd.f32 %v524_v21, %v380_v18  ;;  %v651_v11 = vmax.f32 %v587_v19, 0.0  ;;  %v653_v10 = vmax.f32 %v589_v31, 0.0  ;;  %v650_v28 = vmax.f32 %v586_v55, 0.0 }
  0xc0   :  { %v526_v63 = vmul.f32 %v1390_v50, %v448_v16  ;;  %v527_v13 = vmul.f32 %v1371_v39, %v448_v16  ;;  %v528_v47 = vmul.f32 %v1392_v51, %v448_v16  ;;  %v529_v57 = vmul.f32 %v1373_v40, %v448_v16 }
  0xc1   :  { %v652_v61 = vmax.f32 %v588_v5, 0.0  ;;  %v514_v53 = vmul.f32 %v1390_v50, %v436_v62  ;;  %v515_v23 = vmul.f32 %v1371_v39, %v436_v62  ;;  %v516_v59 = vmul.f32 %v1392_v51, %v436_v62 }
  0xc2   :  { %v591_v7 = vadd.f32 %v527_v13, %v383_v25  ;;  %v593_v0 = vadd.f32 %v529_v57, %v385_v1  ;;  %v590_v29 = vadd.f32 %v526_v63, %v382_v35  ;;  %v592_v60 = vadd.f32 %v528_v47, %v384_v30 }
  0xc3   :  { %v517_v2 = vmul.f32 %v1373_v40, %v436_v62  ;;  %v166_v25 = vmul.f32 %v1377_v42, %v1410_v6  ;;  %v167_v30 = vmul.f32 %v1360_v34, %v1410_v6  ;;  %v168_v1 = vmul.f32 %v1388_v49, %v1410_v6 }
  0xc4   :  { %v75_v56 = vpop.permute.xlu1 %74  ;;  %v655_v12 = vmax.f32 %v591_v7, 0.0  ;;  %v657_v32 = vmax.f32 %v593_v0, 0.0  ;;  %v654_v22 = vmax.f32 %v590_v29, 0.0  ;;  %v656_v26 = vmax.f32 %v592_v60, 0.0 }
  0xc5   :  { %v162_v20 = vmul.f32 %v1377_v42, %v75_v56  ;;  %v163_v17 = vmul.f32 %v1360_v34, %v75_v56  ;;  %v164_v18 = vmul.f32 %v1388_v49, %v75_v56  ;;  %v165_v21 = vmul.f32 %v1369_v38, %v75_v56 }
  0xc6   :  { %v715_v45 = vpack.c.bf16 %v655_v12, %v651_v11  ;;  %v717_v8 = vpack.c.bf16 %v657_v32, %v653_v10  ;;  %v714_v9 = vpack.c.bf16 %v654_v22, %v650_v28  ;;  %v716_v52 = vpack.c.bf16 %v656_v26, %v652_v61 }
  0xc7   :  { %v169_v16 = vmul.f32 %v1369_v38, %v1410_v6 }
  0xc8   :  { %784 = vmatprep.subr.bf16.mxu0 %v715_v45  ;;  %897 = vmatprep.subr.bf16.mxu1 %v717_v8 }
  0xc9   :  { %v228_v43 = vpop.permute.xlu1 %227  ;;  %785 = vmatpush1.bf16.msra.mxu0 %v714_v9  ;;  %898 = vmatpush1.bf16.msra.mxu1 %v716_v52 }
  0xca   :  { %v306_v54 = vmul.f32 %v1375_v41, %v228_v43  ;;  %v307_v14 = vmul.f32 %v1358_v33, %v228_v43  ;;  %v308_v58 = vmul.f32 %v1386_v48, %v228_v43  ;;  %v309_v36 = vmul.f32 %v1367_v37, %v228_v43 }
  0xcc   :  { %v370_v4 = vadd.f32 %v306_v54, %v162_v20  ;;  %v371_v3 = vadd.f32 %v307_v14, %v163_v17  ;;  %v372_v24 = vadd.f32 %v308_v58, %v164_v18  ;;  %v373_v44 = vadd.f32 %v309_v36, %v165_v21  ;;  %v428_v18 = vpop.permute.xlu0 %427 }
  0xcd   :  { %v232_v46 = vpop.permute.xlu1 %231 }
  0xce   :  { %v310_v35 = vmul.f32 %v1375_v41, %v232_v46  ;;  %v311_v19 = vmul.f32 %v1358_v33, %v232_v46  ;;  %v312_v31 = vmul.f32 %v1386_v48, %v232_v46  ;;  %v313_v55 = vmul.f32 %v1367_v37, %v232_v46 }
  0xcf   :  { %v579_v5 = vadd.f32 %v515_v23, %v371_v3  ;;  %v581_v63 = vadd.f32 %v517_v2, %v373_v44  ;;  %v578_v13 = vadd.f32 %v514_v53, %v370_v4  ;;  %v580_v47 = vadd.f32 %v516_v59, %v372_v24 }
  0xd0   :  { %v374_v57 = vadd.f32 %v310_v35, %v166_v25  ;;  %v375_v7 = vadd.f32 %v311_v19, %v167_v30  ;;  %v376_v0 = vadd.f32 %v312_v31, %v168_v1  ;;  %v377_v29 = vadd.f32 %v313_v55, %v169_v16 }
  0xd1   :  { %v643_v22 = vmax.f32 %v579_v5, 0.0  ;;  %v645_v26 = vmax.f32 %v581_v63, 0.0  ;;  %v642_v45 = vmax.f32 %v578_v13, 0.0  ;;  %v644_v8 = vmax.f32 %v580_v47, 0.0 }
  0xd2   :  { %v440_v60 = vpop.permute.xlu1 %439  ;;  %v506_v44 = vmul.f32 %v1390_v50, %v428_v18  ;;  %v507_v46 = vmul.f32 %v1371_v39, %v428_v18  ;;  %v508_v35 = vmul.f32 %v1392_v51, %v428_v18  ;;  %v509_v19 = vmul.f32 %v1373_v40, %v428_v18 }
  0xd3   :  { %v518_v11 = vmul.f32 %v1390_v50, %v440_v60  ;;  %v519_v10 = vmul.f32 %v1371_v39, %v440_v60  ;;  %v520_v28 = vmul.f32 %v1392_v51, %v440_v60  ;;  %v521_v61 = vmul.f32 %v1373_v40, %v440_v60 }
  0xd4   :  { %v158_v47 = vmul.f32 %v1377_v42, %v1420_v15 }
  0xd5   :  { %v583_v56 = vadd.f32 %v519_v10, %v375_v7  ;;  %v585_v12 = vadd.f32 %v521_v61, %v377_v29  ;;  %v582_v6 = vadd.f32 %v518_v11, %v374_v57  ;;  %v584_v32 = vadd.f32 %v520_v28, %v376_v0 }
  0xd6   :  { %v159_v57 = vmul.f32 %v1360_v34, %v1420_v15  ;;  %v160_v7 = vmul.f32 %v1388_v49, %v1420_v15  ;;  %v161_v0 = vmul.f32 %v1369_v38, %v1420_v15 }
  0xd7   :  { %v65_v9 = vpop.permute.xlu1 %64  ;;  %v647_v52 = vmax.f32 %v583_v56, 0.0  ;;  %v649_v43 = vmax.f32 %v585_v12, 0.0  ;;  %v646_v62 = vmax.f32 %v582_v6, 0.0  ;;  %v648_v54 = vmax.f32 %v584_v32, 0.0 }
  0xd8   :  { %v154_v2 = vmul.f32 %v1377_v42, %v65_v9  ;;  %v155_v4 = vmul.f32 %v1360_v34, %v65_v9  ;;  %v156_v3 = vmul.f32 %v1388_v49, %v65_v9  ;;  %v157_v24 = vmul.f32 %v1369_v38, %v65_v9 }
  0xd9   :  { %v711_v14 = vpack.c.bf16 %v647_v52, %v643_v22  ;;  %v713_v58 = vpack.c.bf16 %v649_v43, %v645_v26  ;;  %v710_v36 = vpack.c.bf16 %v646_v62, %v642_v45  ;;  %v712_v20 = vpack.c.bf16 %v648_v54, %v644_v8 }
  0xdb   :  { %786 = vmatprep.subr.bf16.mxu0 %v711_v14  ;;  %899 = vmatprep.subr.bf16.mxu1 %v713_v58 }
  0xdc   :  { %v220_v17 = vpop.permute.xlu1 %219  ;;  %787 = vmatpush1.bf16.msra.mxu0 %v710_v36  ;;  %900 = vmatpush1.bf16.msra.mxu1 %v712_v20 }
  0xdd   :  { %v298_v21 = vmul.f32 %v1375_v41, %v220_v17  ;;  %v299_v53 = vmul.f32 %v1358_v33, %v220_v17  ;;  %v300_v23 = vmul.f32 %v1386_v48, %v220_v17  ;;  %v301_v59 = vmul.f32 %v1367_v37, %v220_v17 }
  0xdf   :  { %v362_v31 = vadd.f32 %v298_v21, %v154_v2  ;;  %v363_v55 = vadd.f32 %v299_v53, %v155_v4  ;;  %v364_v25 = vadd.f32 %v300_v23, %v156_v3  ;;  %v365_v30 = vadd.f32 %v301_v59, %v157_v24 }
  0xe0   :  { %v224_v1 = vpop.permute.xlu1 %223 }
  0xe1   :  { %v302_v16 = vmul.f32 %v1375_v41, %v224_v1  ;;  %v303_v5 = vmul.f32 %v1358_v33, %v224_v1  ;;  %v304_v63 = vmul.f32 %v1386_v48, %v224_v1  ;;  %v305_v13 = vmul.f32 %v1367_v37, %v224_v1 }
  0xe2   :  { %v571_v29 = vadd.f32 %v507_v46, %v363_v55  ;;  %v573_v60 = vadd.f32 %v509_v19, %v365_v30  ;;  %v570_v11 = vadd.f32 %v506_v44, %v362_v31  ;;  %v572_v10 = vadd.f32 %v508_v35, %v364_v25 }
  0xe3   :  { %v366_v28 = vadd.f32 %v302_v16, %v158_v47  ;;  %v367_v61 = vadd.f32 %v303_v5, %v159_v57  ;;  %v368_v56 = vadd.f32 %v304_v63, %v160_v7  ;;  %v369_v12 = vadd.f32 %v305_v13, %v161_v0  ;;  %v420_v5 = vpop.permute.xlu0 %419 }
  0xe4   :  { %v635_v43 = vmax.f32 %v571_v29, 0.0  ;;  %v637_v62 = vmax.f32 %v573_v60, 0.0  ;;  %v634_v54 = vmax.f32 %v570_v11, 0.0  ;;  %v636_v14 = vmax.f32 %v572_v10, 0.0 }
  0xe5   :  { %v432_v6 = vpop.permute.xlu1 %431  ;;  %v498_v7 = vmul.f32 %v1390_v50, %v420_v5  ;;  %v499_v0 = vmul.f32 %v1371_v39, %v420_v5  ;;  %v500_v29 = vmul.f32 %v1392_v51, %v420_v5  ;;  %v501_v60 = vmul.f32 %v1373_v40, %v420_v5 }
  0xe6   :  { %v510_v32 = vmul.f32 %v1390_v50, %v432_v6  ;;  %v511_v22 = vmul.f32 %v1371_v39, %v432_v6  ;;  %v512_v26 = vmul.f32 %v1392_v51, %v432_v6  ;;  %v513_v45 = vmul.f32 %v1373_v40, %v432_v6 }
  0xe7   :  { %v150_v11 = vmul.f32 %v1377_v42, %v1459_v27  ;;  %v151_v10 = vmul.f32 %v1360_v34, %v1459_v27  ;;  %v412_v5 = vpop.permute.xlu0 %411 }
  0xe8   :  { %v575_v8 = vadd.f32 %v511_v22, %v367_v61  ;;  %v577_v9 = vadd.f32 %v513_v45, %v369_v12  ;;  %v574_v15 = vadd.f32 %v510_v32, %v366_v28  ;;  %v576_v52 = vadd.f32 %v512_v26, %v368_v56 }
  0xe9   :  { %v152_v28 = vmul.f32 %v1388_v49, %v1459_v27  ;;  %v153_v61 = vmul.f32 %v1369_v38, %v1459_v27 }
  0xea   :  { %v55_v58 = vpop.permute.xlu1 %54  ;;  %v639_v36 = vmax.f32 %v575_v8, 0.0  ;;  %v641_v20 = vmax.f32 %v577_v9, 0.0  ;;  %v638_v17 = vmax.f32 %v574_v15, 0.0  ;;  %v640_v18 = vmax.f32 %v576_v52, 0.0 }
  0xeb   :  { %v146_v46 = vmul.f32 %v1377_v42, %v55_v58  ;;  %v147_v35 = vmul.f32 %v1360_v34, %v55_v58  ;;  %v148_v19 = vmul.f32 %v1388_v49, %v55_v58  ;;  %v149_v31 = vmul.f32 %v1369_v38, %v55_v58 }
  0xec   :  { %v707_v21 = vpack.c.bf16 %v639_v36, %v635_v43  ;;  %v709_v53 = vpack.c.bf16 %v641_v20, %v637_v62  ;;  %v706_v23 = vpack.c.bf16 %v638_v17, %v634_v54  ;;  %v708_v59 = vpack.c.bf16 %v640_v18, %v636_v14 }
  0xee   :  { %788 = vmatprep.subr.bf16.mxu0 %v707_v21  ;;  %901 = vmatprep.subr.bf16.mxu1 %v709_v53 }
  0xef   :  { %v212_v2 = vpop.permute.xlu1 %211  ;;  %789 = vmatpush1.bf16.msra.mxu0 %v706_v23  ;;  %902 = vmatpush1.bf16.msra.mxu1 %v708_v59 }
  0xf0   :  { %v290_v4 = vmul.f32 %v1375_v41, %v212_v2  ;;  %v291_v3 = vmul.f32 %v1358_v33, %v212_v2  ;;  %v292_v24 = vmul.f32 %v1386_v48, %v212_v2  ;;  %v293_v44 = vmul.f32 %v1367_v37, %v212_v2 }
  0xf2   :  { %v354_v55 = vadd.f32 %v290_v4, %v146_v46  ;;  %v355_v25 = vadd.f32 %v291_v3, %v147_v35  ;;  %v356_v30 = vadd.f32 %v292_v24, %v148_v19  ;;  %v357_v1 = vadd.f32 %v293_v44, %v149_v31 }
  0xf3   :  { %v216_v16 = vpop.permute.xlu1 %215 }
  0xf4   :  { %v294_v63 = vmul.f32 %v1375_v41, %v216_v16  ;;  %v295_v13 = vmul.f32 %v1358_v33, %v216_v16  ;;  %v296_v47 = vmul.f32 %v1386_v48, %v216_v16  ;;  %v297_v57 = vmul.f32 %v1367_v37, %v216_v16 }
  0xf5   :  { %v563_v56 = vadd.f32 %v499_v0, %v355_v25  ;;  %v565_v12 = vadd.f32 %v501_v60, %v357_v1  ;;  %v562_v6 = vadd.f32 %v498_v7, %v354_v55  ;;  %v564_v32 = vadd.f32 %v500_v29, %v356_v30 }
  0xf6   :  { %v358_v22 = vadd.f32 %v294_v63, %v150_v11  ;;  %v359_v26 = vadd.f32 %v295_v13, %v151_v10  ;;  %v360_v45 = vadd.f32 %v296_v47, %v152_v28  ;;  %v361_v8 = vadd.f32 %v297_v57, %v153_v61 }
  0xf7   :  { %v627_v36 = vmax.f32 %v563_v56, 0.0  ;;  %v629_v20 = vmax.f32 %v565_v12, 0.0  ;;  %v626_v17 = vmax.f32 %v562_v6, 0.0  ;;  %v628_v18 = vmax.f32 %v564_v32, 0.0  ;;  %v1889_v12 = vld [vmem:[#allocation3_spill] sm:$0xff] }
  0xf8   :  { %v424_v9 = vpop.permute.xlu1 %423  ;;  %v490_v10 = vmul.f32 %v1390_v50, %v412_v5  ;;  %v491_v28 = vmul.f32 %v1371_v39, %v412_v5  ;;  %v492_v61 = vmul.f32 %v1392_v51, %v412_v5  ;;  %v493_v56 = vmul.f32 %v1373_v40, %v412_v5 }
  0xf9   :  { %v502_v15 = vmul.f32 %v1390_v50, %v424_v9  ;;  %v503_v52 = vmul.f32 %v1371_v39, %v424_v9  ;;  %v504_v43 = vmul.f32 %v1392_v51, %v424_v9  ;;  %v505_v62 = vmul.f32 %v1373_v40, %v424_v9 }
  0xfa   :  { %v142_v6 = vmul.f32 %v1377_v42, %v1889_v12 }
  0xfb   :  { %v567_v54 = vadd.f32 %v503_v52, %v359_v26  ;;  %v569_v14 = vadd.f32 %v505_v62, %v361_v8  ;;  %v566_v27 = vadd.f32 %v502_v15, %v358_v22  ;;  %v568_v58 = vadd.f32 %v504_v43, %v360_v45 }
  0xfd   :  { %v45_v21 = vpop.permute.xlu1 %44  ;;  %v631_v53 = vmax.f32 %v567_v54, 0.0  ;;  %v633_v23 = vmax.f32 %v569_v14, 0.0  ;;  %v630_v59 = vmax.f32 %v566_v27, 0.0  ;;  %v632_v2 = vmax.f32 %v568_v58, 0.0 }
  0xfe   :  { %v138_v25 = vmul.f32 %v1377_v42, %v45_v21  ;;  %v139_v30 = vmul.f32 %v1360_v34, %v45_v21  ;;  %v140_v1 = vmul.f32 %v1388_v49, %v45_v21  ;;  %v141_v16 = vmul.f32 %v1369_v38, %v45_v21 }
  0xff   :  { %v703_v4 = vpack.c.bf16 %v631_v53, %v627_v36  ;;  %v705_v3 = vpack.c.bf16 %v633_v23, %v629_v20  ;;  %v702_v24 = vpack.c.bf16 %v630_v59, %v626_v17  ;;  %v704_v44 = vpack.c.bf16 %v632_v2, %v628_v18  ;;  %v1230_v2 = vld [vmem:[%s1876_s2 + $0x8] sm:$0xff]  }
 0x101   :  { %790 = vmatprep.subr.bf16.mxu0 %v703_v4  ;;  %903 = vmatprep.subr.bf16.mxu1 %v705_v3  ;;  %v1231_v4 = vld [vmem:[%s1876_s2 + $0x10] sm:$0xff]   ;;  %v1232_v3 = vld [vmem:[%s1876_s2 + $0x18] sm:$0xff]  }
 0x102   :  { %v204_v46 = vpop.permute.xlu1 %203  ;;  %791 = vmatpush1.bf16.msra.mxu0 %v702_v24  ;;  %904 = vmatpush1.bf16.msra.mxu1 %v704_v44  ;;  %v1233_v24 = vld [vmem:[%s1876_s2 + $0x20] sm:$0xff]   ;;  %v1234_v44 = vld [vmem:[%s1876_s2 + $0x28] sm:$0xff]  }
 0x103   :  { %v282_v35 = vmul.f32 %v1375_v41, %v204_v46  ;;  %v283_v19 = vmul.f32 %v1358_v33, %v204_v46  ;;  %v284_v31 = vmul.f32 %v1386_v48, %v204_v46  ;;  %v285_v55 = vmul.f32 %v1367_v37, %v204_v46  ;;  %v1235_v46 = vld [vmem:[%s1876_s2 + $0x30] sm:$0xff]  }
 0x105   :  { %v346_v63 = vadd.f32 %v282_v35, %v138_v25  ;;  %v347_v13 = vadd.f32 %v283_v19, %v139_v30  ;;  %v348_v47 = vadd.f32 %v284_v31, %v140_v1  ;;  %v349_v57 = vadd.f32 %v285_v55, %v141_v16  ;;  %v1236_v35 = vld [vmem:[%s1876_s2 + $0x38] sm:$0xff]  }
 0x106   :  { %v208_v7 = vpop.permute.xlu1 %207 }
 0x107   :  { %v286_v0 = vmul.f32 %v1375_v41, %v208_v7  ;;  %v287_v29 = vmul.f32 %v1358_v33, %v208_v7  ;;  %v288_v60 = vmul.f32 %v1386_v48, %v208_v7  ;;  %v289_v11 = vmul.f32 %v1367_v37, %v208_v7 }
 0x108   :  { %v143_v41 = vmul.f32 %v1360_v34, %v1889_v12  ;;  %v144_v33 = vmul.f32 %v1388_v49, %v1889_v12  ;;  %v145_v37 = vmul.f32 %v1369_v38, %v1889_v12  ;;  %v555_v48 = vadd.f32 %v491_v28, %v347_v13 }
 0x109   :  { %v557_v32 = vadd.f32 %v493_v56, %v349_v57  ;;  %v554_v22 = vadd.f32 %v490_v10, %v346_v63  ;;  %v556_v26 = vadd.f32 %v492_v61, %v348_v47  ;;  %v350_v8 = vadd.f32 %v286_v0, %v142_v6 }
 0x10a   :  { %v351_v9 = vadd.f32 %v287_v29, %v143_v41  ;;  %v352_v15 = vadd.f32 %v288_v60, %v144_v33  ;;  %v353_v52 = vadd.f32 %v289_v11, %v145_v37  ;;  %v619_v27 = vmax.f32 %v555_v48, 0.0 }
 0x10b   :  { %v416_v45 = vpop.permute.xlu1 %415  ;;  %v621_v58 = vmax.f32 %v557_v32, 0.0  ;;  %v618_v36 = vmax.f32 %v554_v22, 0.0  ;;  %v620_v20 = vmax.f32 %v556_v26, 0.0 }
 0x10c   :  { %v494_v42 = vmul.f32 %v1390_v50, %v416_v45  ;;  %v495_v43 = vmul.f32 %v1371_v39, %v416_v45  ;;  %v496_v34 = vmul.f32 %v1392_v51, %v416_v45  ;;  %v497_v49 = vmul.f32 %v1373_v40, %v416_v45  ;;  %v1229_v40 = vld [vmem:[%s1876_s2] sm:$0xff]  }
 0x10d   :  { %v1890_v51 = vmov 0  }
 0x10e   :  { %v558_v62 = vadd.f32 %v494_v42, %v350_v8  ;;  %v559_v54 = vadd.f32 %v495_v43, %v351_v9  ;;  %v560_v38 = vadd.f32 %v496_v34, %v352_v15  ;;  %v561_v14 = vadd.f32 %v497_v49, %v353_v52 }
 0x110   :  { %v623_v17 = vmax.f32 %v559_v54, 0.0  ;;  %v625_v18 = vmax.f32 %v561_v14, 0.0  ;;  %v622_v21 = vmax.f32 %v558_v62, 0.0  ;;  %v624_v53 = vmax.f32 %v560_v38, 0.0 }
 0x112   :  { %v699_v23 = vpack.c.bf16 %v623_v17, %v619_v27  ;;  %v701_v50 = vpack.c.bf16 %v625_v18, %v621_v58  ;;  %v698_v59 = vpack.c.bf16 %v622_v21, %v618_v36  ;;  %v700_v39 = vpack.c.bf16 %v624_v53, %v620_v20 }
 0x114   :  { %792 = vmatprep.subr.bf16.mxu0 %v699_v23  ;;  %905 = vmatprep.subr.bf16.mxu1 %v701_v50 }
 0x115   :  { %793 = vmatpush1.bf16.msra.mxu0 %v698_v59  ;;  %906 = vmatpush1.bf16.msra.mxu1 %v700_v39 }
 0x118   :  { %811 = vmatmul.mubr.bf16.vlgmr.msra.gmra.mxu0 %v1229_v40  ;;  %924 = vmatmul.mubr.bf16.vlgmr.msra.gmra.mxu1 %v1229_v40 }
 0x119   :  { %820 = vmatprep.mubr.bf16.mxu0 %v1890_v51  ;;  %933 = vmatprep.mubr.bf16.mxu1 %v1890_v51 }
 0x120   :  { %821 = vmatmul.mubr.bf16.gmra.mxu0 %v1230_v2  ;;  %934 = vmatmul.mubr.bf16.gmra.mxu1 %v1230_v2 }
 0x121   :  { %830 = vmatprep.mubr.bf16.mxu0 %v1890_v51  ;;  %943 = vmatprep.mubr.bf16.mxu1 %v1890_v51 }
 0x128   :  { %831 = vmatmul.mubr.bf16.gmra.mxu0 %v1231_v4  ;;  %944 = vmatmul.mubr.bf16.gmra.mxu1 %v1231_v4 }
 0x129   :  { %840 = vmatprep.mubr.bf16.mxu0 %v1890_v51  ;;  %953 = vmatprep.mubr.bf16.mxu1 %v1890_v51 }
 0x130   :  { %841 = vmatmul.mubr.bf16.gmra.mxu0 %v1232_v3  ;;  %954 = vmatmul.mubr.bf16.gmra.mxu1 %v1232_v3 }
 0x131   :  { %850 = vmatprep.mubr.bf16.mxu0 %v1890_v51  ;;  %963 = vmatprep.mubr.bf16.mxu1 %v1890_v51 }
 0x138   :  { %851 = vmatmul.mubr.bf16.gmra.mxu0 %v1233_v24  ;;  %964 = vmatmul.mubr.bf16.gmra.mxu1 %v1233_v24 }
 0x139   :  { %860 = vmatprep.mubr.bf16.mxu0 %v1890_v51  ;;  %973 = vmatprep.mubr.bf16.mxu1 %v1890_v51 }
 0x140   :  { %861 = vmatmul.mubr.bf16.gmra.mxu0 %v1234_v44  ;;  %974 = vmatmul.mubr.bf16.gmra.mxu1 %v1234_v44 }
 0x141   :  { %870 = vmatprep.mubr.bf16.mxu0 %v1890_v51  ;;  %983 = vmatprep.mubr.bf16.mxu1 %v1890_v51 }
 0x148   :  { %871 = vmatmul.mubr.bf16.gmra.mxu0 %v1235_v46  ;;  %984 = vmatmul.mubr.bf16.gmra.mxu1 %v1235_v46 }
 0x149   :  { %880 = vmatprep.mubr.bf16.mxu0 %v1890_v51  ;;  %993 = vmatprep.mubr.bf16.mxu1 %v1890_v51 }
 0x150   :  { %881 = vmatmul.mubr.bf16.gmra.mxu0 %v1236_v35  ;;  %994 = vmatmul.mubr.bf16.gmra.mxu1 %v1236_v35 }
 0x151   :  { %1135 = vmatprep.mubr.bf16.mxu0 %v1890_v51  ;;  %1176 = vmatprep.mubr.bf16.mxu1 %v1890_v51 }
 0x1d8   :  { %v812_v19 = vpop.f32.mrf.mxu0  ;;  %v925_v31 = vpop.f32.mrf.mxu1 }
 0x1d9   :  { %v1004_v16 = vmax.f32 %v812_v19, 0.0  ;;  %v1006_v5 = vmax.f32 %v925_v31, 0.0 }
 0x1da   :  { %v814_v55 = vpop.f32.mrf.mxu0  ;;  %v927_v25 = vpop.f32.mrf.mxu1 }
 0x1db   :  { %v1005_v47 = vmax.f32 %v814_v55, 0.0  ;;  %v1007_v57 = vmax.f32 %v927_v25, 0.0 }
 0x1dc   :  { %v816_v30 = vpop.f32.mrf.mxu0  ;;  %v929_v1 = vpop.f32.mrf.mxu1 }
 0x1dd   :  { %v1008_v63 = vmax.f32 %v816_v30, 0.0  ;;  %v1010_v13 = vmax.f32 %v929_v1, 0.0 }
 0x1de   :  { %v818_v7 = vpop.f32.mrf.mxu0  ;;  %v931_v0 = vpop.f32.mrf.mxu1 }
 0x1df   :  { %v1748_v29 = vpack.c.bf16 %v1008_v63, %v1004_v16  ;;  %v1750_v60 = vpack.c.bf16 %v1010_v13, %v1006_v5  ;;  %v1009_v11 = vmax.f32 %v818_v7, 0.0  ;;  %v1011_v10 = vmax.f32 %v931_v0, 0.0 }
 0x1e0   :  { %v822_v28 = vpop.f32.mrf.mxu0  ;;  %v935_v61 = vpop.f32.mrf.mxu1 }
 0x1e1   :  { %1891 = vst [vmem:[#allocation3_spill] sm:$0xff] %v1748_v29  ;;  %1892 = vst [vmem:[#allocation4_spill] sm:$0xff] %v1750_v60  ;;  %v1752_v56 = vpack.c.bf16 %v1009_v11, %v1005_v47  ;;  %v1754_v12 = vpack.c.bf16 %v1011_v10, %v1007_v57  ;;  %v1012_v48 = vmax.f32 %v822_v28, 0.0  ;;  %v1014_v32 = vmax.f32 %v935_v61, 0.0 }
 0x1e2   :  { %v824_v6 = vpop.f32.mrf.mxu0  ;;  %v937_v41 = vpop.f32.mrf.mxu1 }
 0x1e3   :  { %1893 = vst [vmem:[#allocation5_spill] sm:$0xff] %v1752_v56  ;;  %1894 = vst [vmem:[#allocation6_spill] sm:$0xff] %v1754_v12  ;;  %v1013_v45 = vmax.f32 %v824_v6, 0.0  ;;  %v1015_v8 = vmax.f32 %v937_v41, 0.0 }
 0x1e4   :  { %v826_v33 = vpop.f32.mrf.mxu0  ;;  %v939_v37 = vpop.f32.mrf.mxu1 }
 0x1e5   :  { %v1016_v22 = vmax.f32 %v826_v33, 0.0  ;;  %v1018_v26 = vmax.f32 %v939_v37, 0.0 }
 0x1e6   :  { %v828_v9 = vpop.f32.mrf.mxu0  ;;  %v941_v15 = vpop.f32.mrf.mxu1 }
 0x1e7   :  { %v1756_v52 = vpack.c.bf16 %v1016_v22, %v1012_v48  ;;  %v1758_v42 = vpack.c.bf16 %v1018_v26, %v1014_v32  ;;  %v1017_v43 = vmax.f32 %v828_v9, 0.0  ;;  %v1019_v34 = vmax.f32 %v941_v15, 0.0 }
 0x1e8   :  { %v1760_v49 = vpop.f32.mrf.mxu0  ;;  %v1762_v62 = vpop.f32.mrf.mxu1 }
 0x1e9   :  { %1895 = vst [vmem:[#allocation7_spill] sm:$0xff] %v1756_v52  ;;  %1896 = vst [vmem:[#allocation8_spill] sm:$0xff] %v1758_v42  ;;  %v1764_v54 = vpack.c.bf16 %v1017_v43, %v1013_v45  ;;  %v1766_v38 = vpack.c.bf16 %v1019_v34, %v1015_v8 }
 0x1ea   :  { %1897 = vst [vmem:[#allocation9_spill] sm:$0xff] %v1760_v49  ;;  %1898 = vst [vmem:[#allocation10_spill] sm:$0xff] %v1762_v62  ;;  %v1768_v14 = vpop.f32.mrf.mxu0  ;;  %v1770_v27 = vpop.f32.mrf.mxu1 }
 0x1eb   :  { %1899 = vst [vmem:[#allocation11_spill] sm:$0xff] %v1764_v54  ;;  %1900 = vst [vmem:[#allocation12_spill] sm:$0xff] %v1766_v38 }
 0x1ec   :  { %v1772_v58 = vpop.f32.mrf.mxu0  ;;  %v1774_v36 = vpop.f32.mrf.mxu1 }
 0x1ee   :  { %v1776_v20 = vpop.f32.mrf.mxu0  ;;  %v1778_v17 = vpop.f32.mrf.mxu1 }
 0x1f0   :  { %v1780_v18 = vpop.f32.mrf.mxu0  ;;  %v1782_v21 = vpop.f32.mrf.mxu1 }
 0x1f2   :  { %v1784_v53 = vpop.f32.mrf.mxu0  ;;  %v1786_v23 = vpop.f32.mrf.mxu1 }
 0x1f4   :  { %v1788_v50 = vpop.f32.mrf.mxu0  ;;  %v1790_v59 = vpop.f32.mrf.mxu1 }
 0x1f6   :  { %v1792_v39 = vpop.f32.mrf.mxu0  ;;  %v1794_v40 = vpop.f32.mrf.mxu1 }
 0x1f8   :  { %v1796_v51 = vpop.f32.mrf.mxu0  ;;  %v1798_v2 = vpop.f32.mrf.mxu1 }
 0x1fa   :  { %v1800_v4 = vpop.f32.mrf.mxu0  ;;  %v1802_v3 = vpop.f32.mrf.mxu1 }
 0x1fc   :  { %v1804_v24 = vpop.f32.mrf.mxu0  ;;  %v1806_v44 = vpop.f32.mrf.mxu1 }
 0x1fe   :  { %v1808_v46 = vpop.f32.mrf.mxu0  ;;  %v1810_v35 = vpop.f32.mrf.mxu1 }
 0x200   :  { %v1812_v19 = vpop.f32.mrf.mxu0  ;;  %v1814_v31 = vpop.f32.mrf.mxu1 }
 0x202   :  { %v864_v55 = vpop.f32.mrf.mxu0  ;;  %v977_v25 = vpop.f32.mrf.mxu1 }
 0x204   :  { %v1816_v30 = vpop.f32.mrf.mxu0  ;;  %v1818_v1 = vpop.f32.mrf.mxu1 }
 0x206   :  { %v868_v16 = vpop.f32.mrf.mxu0  ;;  %v981_v5 = vpop.f32.mrf.mxu1 }
 0x208   :  { %v872_v63 = vpop.f32.mrf.mxu0  ;;  %v985_v13 = vpop.f32.mrf.mxu1 }
 0x20a   :  { %v874_v47 = vpop.f32.mrf.mxu0  ;;  %v987_v57 = vpop.f32.mrf.mxu1 }
 0x20b   :  { %v1053_v12 = vmax.f32 %v874_v47, 0.0  ;;  %v1055_v56 = vmax.f32 %v987_v57, 0.0  ;;  %v1048_v47 = vmax.f32 %v1816_v30, 0.0  ;;  %v1050_v57 = vmax.f32 %v1818_v1, 0.0 }
 0x20c   :  { %v876_v7 = vpop.f32.mrf.mxu0  ;;  %v989_v0 = vpop.f32.mrf.mxu1  ;;  %v1036_v1 = vmax.f32 %v1796_v51, 0.0  ;;  %v1027_v51 = vmax.f32 %v1778_v17, 0.0 }
 0x20d   :  { %v1056_v38 = vmax.f32 %v876_v7, 0.0  ;;  %v1058_v54 = vmax.f32 %v989_v0, 0.0  ;;  %v1028_v7 = vmax.f32 %v1780_v18, 0.0 }
 0x20e   :  { %v878_v11 = vpop.f32.mrf.mxu0  ;;  %v991_v10 = vpop.f32.mrf.mxu1 }
 0x20f   :  { %v1057_v48 = vmax.f32 %v878_v11, 0.0  ;;  %v1059_v32 = vmax.f32 %v991_v10, 0.0  ;;  %v1049_v11 = vmax.f32 %v868_v16, 0.0  ;;  %v1051_v10 = vmax.f32 %v981_v5, 0.0 }
 0x210   :  { %v882_v28 = vpop.f32.mrf.mxu0  ;;  %v995_v61 = vpop.f32.mrf.mxu1  ;;  %v1041_v16 = vmax.f32 %v1808_v46, 0.0 }
 0x211   :  { %v1060_v60 = vmax.f32 %v882_v28, 0.0  ;;  %v1062_v29 = vmax.f32 %v995_v61, 0.0  ;;  %v1045_v28 = vmax.f32 %v864_v55, 0.0  ;;  %v1047_v61 = vmax.f32 %v977_v25, 0.0 }
 0x212   :  { %v884_v6 = vpop.f32.mrf.mxu0  ;;  %v997_v41 = vpop.f32.mrf.mxu1  ;;  %v1039_v55 = vmax.f32 %v1802_v3, 0.0  ;;  %v1033_v25 = vmax.f32 %v1792_v39, 0.0  ;;  %v1029_v3 = vmax.f32 %v1784_v53, 0.0  ;;  %v1034_v39 = vmax.f32 %v1790_v59, 0.0 }
 0x213   :  { %v1061_v9 = vmax.f32 %v884_v6, 0.0  ;;  %v1063_v15 = vmax.f32 %v997_v41, 0.0  ;;  %v1052_v6 = vmax.f32 %v872_v63, 0.0  ;;  %v1054_v41 = vmax.f32 %v985_v13, 0.0 }
 0x214   :  { %v886_v33 = vpop.f32.mrf.mxu0  ;;  %v999_v37 = vpop.f32.mrf.mxu1  ;;  %v1025_v63 = vmax.f32 %v1776_v20, 0.0  ;;  %v1082_v13 = vpack.c.bf16 %v1033_v25, %v1029_v3  ;;  %v1030_v53 = vmax.f32 %v1782_v21, 0.0  ;;  %v1024_v59 = vmax.f32 %v1772_v58, 0.0  ;;  %v1904_v58 = vld [vmem:[#allocation12_spill] sm:$0xff] }
 0x215   :  { %v1064_v22 = vmax.f32 %v886_v33, 0.0  ;;  %v1066_v26 = vmax.f32 %v999_v37, 0.0  ;;  %v1094_v33 = vpack.c.bf16 %v1057_v48, %v1053_v12  ;;  %v1096_v37 = vpack.c.bf16 %v1059_v32, %v1055_v56 }
 0x216   :  { %v888_v45 = vpop.f32.mrf.mxu0  ;;  %v1001_v8 = vpop.f32.mrf.mxu1  ;;  %v1043_v56 = vmax.f32 %v1810_v35, 0.0  ;;  %v1090_v12 = vpack.c.bf16 %v1049_v11, %v1045_v28  ;;  %v1026_v20 = vmax.f32 %v1774_v36, 0.0  ;;  %v1083_v17 = vpack.c.bf16 %v1034_v39, %v1030_v53  ;;  %v1905_v36 = vld [vmem:[#allocation7_spill] sm:$0xff] }
 0x217   :  { %v1065_v43 = vmax.f32 %v888_v45, 0.0  ;;  %v1067_v34 = vmax.f32 %v1001_v8, 0.0  ;;  %v1097_v62 = vpack.c.bf16 %v1064_v22, %v1060_v60  ;;  %v1099_v49 = vpack.c.bf16 %v1066_v26, %v1062_v29  ;;  %v1901_v22 = vld [vmem:[#allocation9_spill] sm:$0xff]  ;;  %v1902_v26 = vld [vmem:[#allocation10_spill] sm:$0xff]  ;;  %v1903_v45 = vld [vmem:[#allocation11_spill] sm:$0xff] }
 0x218   :  { %v1093_v60 = vpack.c.bf16 %v1056_v38, %v1052_v6  ;;  %v1095_v29 = vpack.c.bf16 %v1058_v54, %v1054_v41  ;;  %v1040_v54 = vmax.f32 %v1804_v24, 0.0  ;;  %v1042_v38 = vmax.f32 %v1806_v44, 0.0  ;;  %v1906_v8 = vld [vmem:[#allocation8_spill] sm:$0xff]  ;;  %v1068_v11 = vld [vmem:[%s1877_s3] sm:$0xf] }
 0x219   :  { %v1098_v42 = vpack.c.bf16 %v1065_v43, %v1061_v9  ;;  %v1100_v52 = vpack.c.bf16 %v1067_v34, %v1063_v15  ;;  %v1031_v24 = vmax.f32 %v1786_v23, 0.0  ;;  %v1032_v44 = vmax.f32 %v1788_v50, 0.0  ;;  %v1907_v9 = vld [vmem:[#allocation5_spill] sm:$0xff]  ;;  %v1908_v15 = vld [vmem:[#allocation6_spill] sm:$0xff]  ;;  %v1909_v43 = vld [vmem:[#allocation3_spill] sm:$0xff] }
 0x21a   :  { %v1085_v5 = vpack.c.bf16 %v1040_v54, %v1036_v1  ;;  %v1021_v23 = vmax.f32 %v1768_v14, 0.0  ;;  %v1023_v50 = vmax.f32 %v1770_v27, 0.0  ;;  %v1020_v18 = vmax.f32 %v1901_v22, 0.0  ;;  %v1910_v34 = vld [vmem:[#allocation4_spill] sm:$0xff] }
 0x21b   :  { %1103 = vmatprep.subr.bf16.mxu0 %v1098_v42  ;;  %1144 = vmatprep.subr.bf16.mxu1 %v1100_v52  ;;  %v1092_v52 = vpack.c.bf16 %v1051_v10, %v1047_v61  ;;  %v1044_v42 = vmax.f32 %v1812_v19, 0.0  ;;  %v1035_v19 = vmax.f32 %v1794_v40, 0.0  ;;  %v1081_v0 = vpack.c.bf16 %v1032_v44, %v1028_v7 }
 0x21c   :  { %1104 = vmatpush1.bf16.msra.mxu0 %v1097_v62  ;;  %1145 = vmatpush1.bf16.msra.mxu1 %v1099_v49  ;;  %v1046_v49 = vmax.f32 %v1814_v31, 0.0  ;;  %v1037_v62 = vmax.f32 %v1800_v4, 0.0  ;;  %v1088_v31 = vpack.c.bf16 %v1043_v56, %v1039_v55  ;;  %v1038_v4 = vmax.f32 %v1798_v2, 0.0 }
 0x21d   :  { %1105 = vmatprep.subr.bf16.mxu0 %v1094_v33  ;;  %1146 = vmatprep.subr.bf16.mxu1 %v1096_v37  ;;  %v1089_v46 = vpack.c.bf16 %v1048_v47, %v1044_v42  ;;  %v1084_v2 = vpack.c.bf16 %v1035_v19, %v1031_v24  ;;  %v1078_v48 = vpack.c.bf16 %v1025_v63, %v1021_v23  ;;  %v1022_v21 = vmax.f32 %v1902_v26, 0.0 }
 0x21e   :  { %v1091_v35 = vpack.c.bf16 %v1050_v57, %v1046_v49  ;;  %v1086_v30 = vpack.c.bf16 %v1041_v16, %v1037_v62  ;;  %v1087_v40 = vpack.c.bf16 %v1042_v38, %v1038_v4  ;;  %v1080_v32 = vpack.c.bf16 %v1027_v51, %v1023_v50 }
 0x21f   :  { %v1077_v14 = vpack.c.bf16 %v1024_v59, %v1020_v18  ;;  %v1079_v27 = vpack.c.bf16 %v1026_v20, %v1022_v21  ;;  %v1102_v10 = vstv %s1878_s4 }
 0x220   :  { %1106 = vmatpush1.bf16.msra.mxu0 %v1093_v60  ;;  %1147 = vmatpush1.bf16.msra.mxu1 %v1095_v29 }
 0x221   :  { %1107 = vmatprep.subr.bf16.mxu0 %v1090_v12  ;;  %1148 = vmatprep.subr.bf16.mxu1 %v1092_v52 }
 0x224   :  { %1108 = vmatpush1.bf16.msra.mxu0 %v1089_v46  ;;  %1149 = vmatpush1.bf16.msra.mxu1 %v1091_v35 }
 0x225   :  { %1109 = vmatprep.subr.bf16.mxu0 %v1086_v30  ;;  %1150 = vmatprep.subr.bf16.mxu1 %v1088_v31 }
 0x228   :  { %1110 = vmatpush1.bf16.msra.mxu0 %v1085_v5  ;;  %1151 = vmatpush1.bf16.msra.mxu1 %v1087_v40 }
 0x229   :  { %1111 = vmatprep.subr.bf16.mxu0 %v1082_v13  ;;  %1152 = vmatprep.subr.bf16.mxu1 %v1084_v2 }
 0x22c   :  { %1112 = vmatpush1.bf16.msra.mxu0 %v1081_v0  ;;  %1153 = vmatpush1.bf16.msra.mxu1 %v1083_v17 }
 0x22d   :  { %1113 = vmatprep.subr.bf16.mxu0 %v1078_v48  ;;  %1154 = vmatprep.subr.bf16.mxu1 %v1080_v32 }
 0x230   :  { %1114 = vmatpush1.bf16.msra.mxu0 %v1077_v14  ;;  %1155 = vmatpush1.bf16.msra.mxu1 %v1079_v27 }
 0x231   :  { %1115 = vmatprep.subr.bf16.mxu0 %v1903_v45  ;;  %1156 = vmatprep.subr.bf16.mxu1 %v1904_v58 }
 0x234   :  { %1116 = vmatpush1.bf16.msra.mxu0 %v1905_v36  ;;  %1157 = vmatpush1.bf16.msra.mxu1 %v1906_v8 }
 0x235   :  { %1117 = vmatprep.subr.bf16.mxu0 %v1907_v9  ;;  %1158 = vmatprep.subr.bf16.mxu1 %v1908_v15 }
 0x238   :  { %1118 = vmatpush1.bf16.msra.mxu0 %v1909_v43  ;;  %1159 = vmatpush1.bf16.msra.mxu1 %v1910_v34 }
 0x23b   :  { %1136 = vmatmul.mubr.bf16.vlgmr.msra.gmra.mxu0 %v1068_v11  ;;  %1177 = vmatmul.mubr.bf16.vlgmr.msra.gmra.mxu1 %v1068_v11 }
 0x2fb   :  { %v1137_v33 = vpop.f32.mrf.mxu0  ;;  %v1178_v37 = vpop.f32.mrf.mxu1 }
 0x2fc   :  { %v1138_v6 = vadd.f32 %v1137_v33, %v1102_v10  ;;  %v1179_v41 = vadd.f32 %v1178_v37, %v1102_v10 }
 0x2fd   :  { %v1139_v28 = vpop.f32.mrf.mxu0  ;;  %v1180_v61 = vpop.f32.mrf.mxu1 }
 0x2fe   :  { %1185 = vst [vmem:[%s1879_s5] sm:$0xff] %v1138_v6  ;;  %1187 = vst [vmem:[%s1879_s5 + $0x10] sm:$0xff] %v1179_v41  ;;  %v1140_v47 = vadd.f32 %v1139_v28, %v1102_v10  ;;  %v1181_v57 = vadd.f32 %v1180_v61, %v1102_v10 }
 0x2ff   :  { %v1141_v60 = vpop.f32.mrf.mxu0  ;;  %v1182_v29 = vpop.f32.mrf.mxu1 }
 0x300   :  { %1186 = vst [vmem:[%s1879_s5 + $0x8] sm:$0xff] %v1140_v47  ;;  %1188 = vst [vmem:[%s1879_s5 + $0x18] sm:$0xff] %v1181_v57 }
 0x301   :  { %v1142_v16 = vpop.f32.mrf.mxu0  ;;  %v1183_v56 = vpop.f32.mrf.mxu1 }

</bundles_post_ra>
